<compile_context>
chip_gen: v7x
topology: tpu7x:2x2x1
jax: 0.10.0
libtpu: 0.0.40
codegen_flags: <defaults>
</compile_context>

<pallas_src>
import functools

import jax
import jax.numpy as jnp
from jax.experimental import pallas as pl
from jax.experimental.pallas import tpu as pltpu

BN_EPS = 1e-5


def _bn_train_affine(x, w, b):
    """PyTorch BatchNorm1d training mode (batch mean, biased variance), fused affine apply."""
    mu = jnp.mean(x, axis=0, keepdims=True)
    var = jnp.mean((x - mu) ** 2, axis=0, keepdims=True)
    scale = w * jax.lax.rsqrt(var + BN_EPS)
    shift = b - mu * scale
    return x * scale + shift


def make_model_kernel(num_blocks, num_mod_linears, aug_dim, control_dim, h0_per_block):
    """Fully fused forward kernel.

    Ref order:
      xin (packed [drug | logdose | control]),
      mod_w0_stacked, mod_b0_stacked,
      [mod_wmid_i]*n_mid, [mod_bmid_i]*n_mid, mod_wlast, mod_blast   (only if num_mod_linears >= 2),
      fc1_w, fc2_w, bn1_wb, bn2_wb, dec_w, dec_b, out_ref
    """
    C = control_dim
    n_mid = max(num_mod_linears - 2, 0)

    def kernel(*refs):
        it = iter(refs)
        xin_ref = next(it)
        mod_w0_ref = next(it)
        mod_b0_ref = next(it)
        if num_mod_linears >= 2:
            mod_wmid_refs = [next(it) for _ in range(n_mid)]
            mod_bmid_refs = [next(it) for _ in range(n_mid)]
            mod_wlast_ref = next(it)
            mod_blast_ref = next(it)
        fc1_w_ref = next(it)
        fc2_w_ref = next(it)
        bn1_wb_ref = next(it)
        bn2_wb_ref = next(it)
        dec_w_ref = next(it)
        dec_b_ref = next(it)
        out_ref = next(it)

        xin = xin_ref[...]                      # (B, aug_dim + C), resident for whole forward
        drug_aug = xin[:, :aug_dim]             # (B, drug_dim + 1) : [drug | logdose]
        x = xin[:, aug_dim:]                    # (B, C) control embedding / residual stream

        # ---------------- FiLM modulators, hoisted (depend only on drug/dose) -------------
        # Layer 0 for ALL blocks in one wide matmul (weights stacked along N).
        h0 = (jnp.dot(drug_aug, mod_w0_ref[...], preferred_element_type=jnp.float32)
              + mod_b0_ref[...])

        gammas, betas = [], []
        if num_mod_linears == 1:
            # Single linear maps directly to [gamma | beta] per block.
            for b in range(num_blocks):
                off = b * 2 * C
                gammas.append(h0[:, off:off + C])
                betas.append(h0[:, off + C:off + 2 * C])
        else:
            h0 = jnp.maximum(h0, 0.0)
            for b in range(num_blocks):
                h = h0[:, b * h0_per_block:(b + 1) * h0_per_block]
                for i in range(n_mid):
                    h = jnp.maximum(
                        jnp.dot(h, mod_wmid_refs[i][b], preferred_element_type=jnp.float32)
                        + mod_bmid_refs[i][b], 0.0)
                # One (H, 2C) matmul per block; gamma/beta split is a near-free lane slice.
                gb = (jnp.dot(h, mod_wlast_ref[b], preferred_element_type=jnp.float32)
                      + mod_blast_ref[b])
                gammas.append(gb[:, :C])
                betas.append(gb[:, C:])

        # ---------------- Sequential FiLM residual blocks --------------------------------
        for b in range(num_blocks):
            m = gammas[b] * x + betas[b]
            # fc1/fc2 biases omitted: a per-feature bias right before training-mode
            # BatchNorm cancels exactly (mean shifts by the same constant, var unchanged).
            h1 = jnp.dot(m, fc1_w_ref[b], preferred_element_type=jnp.float32)
            bn1 = bn1_wb_ref[b]                 # (2, H): [weight; bias]
            h1 = _bn_train_affine(h1, bn1[0:1], bn1[1:2])
            h1 = jnp.maximum(h1, 0.0)
            h2 = jnp.dot(h1, fc2_w_ref[b], preferred_element_type=jnp.float32)
            bn2 = bn2_wb_ref[b]                 # (2, C)
            h2 = _bn_train_affine(h2, bn2[0:1], bn2[1:2])
            x = h2 + x

        # ---------------- decoder (single Linear), lane-dense padded output --------------
        out_ref[...] = (jnp.dot(x, dec_w_ref[...], preferred_element_type=jnp.float32)
                        + dec_b_ref[...])

    return kernel


# ----------------------------- parameter packing (done once) -----------------------------

def pack_params(params, control_dim):
    """Stack per-block parameters by role into a handful of wide arrays."""
    blocks = params["blocks"]
    nb = len(blocks)
    n_mod = len(blocks[0]["modulator"])
    for bp in blocks:
        assert len(bp["modulator"]) == n_mod, "all blocks must share the modulator depth"

    packed = {}
    # Layer 0: stack over blocks along the output (N) axis -> one wide matmul.
    packed["mod_w0"] = jnp.concatenate([bp["modulator"][0][0] for bp in blocks], axis=1)
    packed["mod_b0"] = jnp.concatenate([bp["modulator"][0][1] for bp in blocks], axis=1)
    if n_mod >= 2:
        packed["mod_wmid"] = [jnp.stack([bp["modulator"][i][0] for bp in blocks])
                              for i in range(1, n_mod - 1)]
        packed["mod_bmid"] = [jnp.stack([bp["modulator"][i][1] for bp in blocks])
                              for i in range(1, n_mod - 1)]
        packed["mod_wlast"] = jnp.stack([bp["modulator"][-1][0] for bp in blocks])   # (nb, Hl, 2C)
        packed["mod_blast"] = jnp.stack([bp["modulator"][-1][1] for bp in blocks])   # (nb, 1, 2C)

    packed["fc1_w"] = jnp.stack([bp["fc1_w"] for bp in blocks])                      # (nb, C, H)
    packed["fc2_w"] = jnp.stack([bp["fc2_w"] for bp in blocks])                      # (nb, H, C)
    # fc1_b / fc2_b intentionally NOT shipped: no-ops before training-mode BatchNorm.
    packed["bn1_wb"] = jnp.stack(
        [jnp.concatenate([bp["bn1_w"], bp["bn1_b"]], axis=0) for bp in blocks])      # (nb, 2, H)
    packed["bn2_wb"] = jnp.stack(
        [jnp.concatenate([bp["bn2_w"], bp["bn2_b"]], axis=0) for bp in blocks])      # (nb, 2, C)

    # Decoder, zero-padded to a lane-dense (multiple-of-128) output width.
    out_dim = params["dec_w"].shape[1]
    out_pad = ((out_dim + 127) // 128) * 128
    dec_w = jnp.zeros((control_dim, out_pad), jnp.float32).at[:, :out_dim].set(params["dec_w"])
    dec_b = jnp.zeros((1, out_pad), jnp.float32).at[:, :out_dim].set(params["dec_b"])
    packed["dec_w"], packed["dec_b"] = dec_w, dec_b
    return packed


@functools.partial(jax.jit, static_argnames=("output_dim",))
def film_residual_model(control_emb, drug_emb, logdose, packed, output_dim):
    nb, C, _H = packed["fc1_w"].shape
    aug_dim = packed["mod_w0"].shape[0]
    n_mid = len(packed.get("mod_wmid", []))
    has_last = "mod_wlast" in packed
    num_mod_linears = (n_mid + 2) if has_last else 1
    h0_per_block = packed["mod_w0"].shape[1] // nb
    out_pad = packed["dec_w"].shape[1]

    # One packed input array: [drug | logdose | control]  (single burst-friendly DMA).
    xin = jnp.concatenate(
        [drug_emb.astype(jnp.float32), logdose.astype(jnp.float32),
         control_emb.astype(jnp.float32)], axis=-1)

    args = [xin, packed["mod_w0"], packed["mod_b0"]]
    if has_last:
        args += list(packed["mod_wmid"]) + list(packed["mod_bmid"])
        args += [packed["mod_wlast"], packed["mod_blast"]]
    args += [packed["fc1_w"], packed["fc2_w"], packed["bn1_wb"], packed["bn2_wb"],
             packed["dec_w"], packed["dec_b"]]

    kernel = make_model_kernel(nb, num_mod_linears, aug_dim, C, h0_per_block)

    out = pl.pallas_call(
        kernel,
        out_shape=jax.ShapeDtypeStruct((control_emb.shape[0], out_pad), jnp.float32),
        in_specs=[pl.BlockSpec(memory_space=pltpu.MemorySpace.VMEM)] * len(args),
        out_specs=pl.BlockSpec(memory_space=pltpu.MemorySpace.VMEM),
        compiler_params=pltpu.CompilerParams(vmem_limit_bytes=32 * 1024 * 1024),
    )(*args)
    return out[:, :output_dim]


# ----------------------------- parameter init (deterministic) -----------------------------

def _linear(key, in_dim, out_dim, scale=0.1):
    kw, kb = jax.random.split(key)
    w = scale * jax.random.normal(kw, (in_dim, out_dim), jnp.float32)
    b = scale * jax.random.normal(kb, (1, out_dim), jnp.float32)
    return w, b


def init_params(key, control_dim, drug_dim, modulator_hidden_dims,
                block_hidden_dim, num_blocks, output_dim):
    params = {"blocks": []}
    for _ in range(num_blocks):
        key, k_mod, k_fc1, k_fc2 = jax.random.split(key, 4)
        dims = [drug_dim + 1] + list(modulator_hidden_dims) + [2 * control_dim]
        mod_layers = []
        for di, do in zip(dims[:-1], dims[1:]):
            k_mod, kk = jax.random.split(k_mod)
            mod_layers.append(_linear(kk, di, do))
        fc1_w, fc1_b = _linear(k_fc1, control_dim, block_hidden_dim)
        fc2_w, fc2_b = _linear(k_fc2, block_hidden_dim, control_dim)
        params["blocks"].append({
            "modulator": mod_layers,
            "fc1_w": fc1_w, "fc1_b": fc1_b,
            "bn1_w": jnp.ones((1, block_hidden_dim), jnp.float32),
            "bn1_b": jnp.zeros((1, block_hidden_dim), jnp.float32),
            "fc2_w": fc2_w, "fc2_b": fc2_b,
            "bn2_w": jnp.ones((1, control_dim), jnp.float32),
            "bn2_b": jnp.zeros((1, control_dim), jnp.float32),
        })
    key, k_dec = jax.random.split(key)
    dec_w, dec_b = _linear(k_dec, control_dim, output_dim)
    params["dec_w"], params["dec_b"] = dec_w, dec_b
    return params


# ----------------------------- pure-JAX reference (for checking) -----------------------------

def _batchnorm_ref(x, w, b):
    mu = jnp.mean(x, axis=0, keepdims=True)
    var = jnp.mean((x - mu) ** 2, axis=0, keepdims=True)
    return (x - mu) * jax.lax.rsqrt(var + BN_EPS) * w + b


def reference_model(control_emb, drug_emb, logdose, params, control_dim):
    drug_input = jnp.concatenate([drug_emb, logdose], axis=-1)
    x = control_emb
    for bp in params["blocks"]:
        h = drug_input
        n = len(bp["modulator"])
        for i, (w, b) in enumerate(bp["modulator"]):
            h = h @ w + b
            if i < n - 1:
                h = jnp.maximum(h, 0.0)
        gamma, beta = h[:, :control_dim], h[:, control_dim:]
        m = gamma * x + beta
        h1 = m @ bp["fc1_w"] + bp["fc1_b"]
        h1 = _batchnorm_ref(h1, bp["bn1_w"], bp["bn1_b"])
        h1 = jnp.maximum(h1, 0.0)
        h2 = h1 @ bp["fc2_w"] + bp["fc2_b"]
        h2 = _batchnorm_ref(h2, bp["bn2_w"], bp["bn2_b"])
        x = h2 + x
    return x @ params["dec_w"] + params["dec_b"]


if __name__ == "__main__":
    batch = 8
    control_dim = 32
    drug_dim = 16
    modulator_hidden_dims = [32]
    block_hidden_dim = 64
    num_blocks = 2
    output_dim = 24
    # dropout_rate exists in the module config but nn.Dropout is never applied in forward.

    key = jax.random.PRNGKey(0)
    key, k_c, k_d, k_l, k_p = jax.random.split(key, 5)
    control_emb = jax.random.normal(k_c, (batch, control_dim), jnp.float32)
    drug_emb = jax.random.normal(k_d, (batch, drug_dim), jnp.float32)
    logdose = jax.random.normal(k_l, (batch, 1), jnp.float32)

    params = init_params(k_p, control_dim, drug_dim, modulator_hidden_dims,
                         block_hidden_dim, num_blocks, output_dim)
    packed = pack_params(params, control_dim)

    out = film_residual_model(control_emb, drug_emb, logdose, packed, output_dim=output_dim)
    out = jax.block_until_ready(out)

    ref = reference_model(control_emb, drug_emb, logdose, params, control_dim)
    assert out.shape == (batch, output_dim)
    assert jnp.allclose(out, ref, atol=1e-4, rtol=1e-4), "mismatch vs pure-JAX reference"

    print("KERNEL_OK")
</pallas_src>

<mosaic_0001>
module attributes {stable_mosaic.version = 11 : i64} {
  func.func @kernel(%arg0: memref<8x49xf32, #tpu.memory_space<vmem>>, %arg1: memref<17x64xf32, #tpu.memory_space<vmem>>, %arg2: memref<1x64xf32, #tpu.memory_space<vmem>>, %arg3: memref<2x32x64xf32, #tpu.memory_space<vmem>>, %arg4: memref<2x1x64xf32, #tpu.memory_space<vmem>>, %arg5: memref<2x32x64xf32, #tpu.memory_space<vmem>>, %arg6: memref<2x64x32xf32, #tpu.memory_space<vmem>>, %arg7: memref<2x2x64xf32, #tpu.memory_space<vmem>>, %arg8: memref<2x2x32xf32, #tpu.memory_space<vmem>>, %arg9: memref<32x128xf32, #tpu.memory_space<vmem>>, %arg10: memref<1x128xf32, #tpu.memory_space<vmem>>, %arg11: memref<8x128xf32, #tpu.memory_space<vmem>>) attributes {dimension_semantics = [], scalar_prefetch = 0 : i64, scratch_operands = 0 : i64, tpu.core_type = #tpu.core_type<tc>} {
    %c0 = arith.constant 0 : index
    %c0_0 = arith.constant 0 : index
    %0 = vector.load %arg0[%c0, %c0_0] : memref<8x49xf32, #tpu.memory_space<vmem>>, vector<8x49xf32>
    %1 = vector.extract_strided_slice %0 {offsets = [0, 0], sizes = [8, 17], strides = [1, 1]} : vector<8x49xf32> to vector<8x17xf32>
    %2 = vector.extract_strided_slice %0 {offsets = [0, 17], sizes = [8, 32], strides = [1, 1]} : vector<8x49xf32> to vector<8x32xf32>
    %c0_1 = arith.constant 0 : index
    %c0_2 = arith.constant 0 : index
    %3 = vector.load %arg1[%c0_1, %c0_2] : memref<17x64xf32, #tpu.memory_space<vmem>>, vector<17x64xf32>
    %cst = arith.constant dense<0.000000e+00> : vector<8x64xf32>
    %4 = tpu.matmul %1, %3, %cst {dimension_numbers = #tpu.dot_dimension_numbers<[1], [0], [0], [1], [0, 0, 1, 1], [], []>} : vector<8x17xf32>, vector<17x64xf32>, vector<8x64xf32> -> vector<8x64xf32>
    %c0_3 = arith.constant 0 : index
    %c0_4 = arith.constant 0 : index
    %5 = vector.load %arg2[%c0_3, %c0_4] : memref<1x64xf32, #tpu.memory_space<vmem>>, vector<1x64xf32>
    %6 = vector.broadcast %5 : vector<1x64xf32> to vector<8x64xf32>
    %7 = arith.addf %4, %6 : vector<8x64xf32>
    %cst_5 = arith.constant 0.000000e+00 : f32
    %8 = vector.broadcast %cst_5 : f32 to vector<8x64xf32>
    %9 = arith.maximumf %7, %8 : vector<8x64xf32>
    %10 = vector.extract_strided_slice %9 {offsets = [0, 0], sizes = [8, 32], strides = [1, 1]} : vector<8x64xf32> to vector<8x32xf32>
    %c0_6 = arith.constant 0 : index
    %c0_7 = arith.constant 0 : index
    %c0_8 = arith.constant 0 : index
    %11 = vector.load %arg3[%c0_6, %c0_7, %c0_8] : memref<2x32x64xf32, #tpu.memory_space<vmem>>, vector<1x32x64xf32>
    %12 = vector.shape_cast %11 : vector<1x32x64xf32> to vector<32x64xf32>
    %cst_9 = arith.constant dense<0.000000e+00> : vector<8x64xf32>
    %13 = tpu.matmul %10, %12, %cst_9 {dimension_numbers = #tpu.dot_dimension_numbers<[1], [0], [0], [1], [0, 0, 1, 1], [], []>} : vector<8x32xf32>, vector<32x64xf32>, vector<8x64xf32> -> vector<8x64xf32>
    %c0_10 = arith.constant 0 : index
    %c0_11 = arith.constant 0 : index
    %c0_12 = arith.constant 0 : index
    %14 = vector.load %arg4[%c0_10, %c0_11, %c0_12] : memref<2x1x64xf32, #tpu.memory_space<vmem>>, vector<1x1x64xf32>
    %15 = vector.shape_cast %14 : vector<1x1x64xf32> to vector<1x64xf32>
    %16 = vector.broadcast %15 : vector<1x64xf32> to vector<8x64xf32>
    %17 = arith.addf %13, %16 : vector<8x64xf32>
    %18 = vector.extract_strided_slice %17 {offsets = [0, 0], sizes = [8, 32], strides = [1, 1]} : vector<8x64xf32> to vector<8x32xf32>
    %19 = vector.extract_strided_slice %17 {offsets = [0, 32], sizes = [8, 32], strides = [1, 1]} : vector<8x64xf32> to vector<8x32xf32>
    %20 = vector.extract_strided_slice %9 {offsets = [0, 32], sizes = [8, 32], strides = [1, 1]} : vector<8x64xf32> to vector<8x32xf32>
    %c1 = arith.constant 1 : index
    %c0_13 = arith.constant 0 : index
    %c0_14 = arith.constant 0 : index
    %21 = vector.load %arg3[%c1, %c0_13, %c0_14] : memref<2x32x64xf32, #tpu.memory_space<vmem>>, vector<1x32x64xf32>
    %22 = vector.shape_cast %21 : vector<1x32x64xf32> to vector<32x64xf32>
    %cst_15 = arith.constant dense<0.000000e+00> : vector<8x64xf32>
    %23 = tpu.matmul %20, %22, %cst_15 {dimension_numbers = #tpu.dot_dimension_numbers<[1], [0], [0], [1], [0, 0, 1, 1], [], []>} : vector<8x32xf32>, vector<32x64xf32>, vector<8x64xf32> -> vector<8x64xf32>
    %c1_16 = arith.constant 1 : index
    %c0_17 = arith.constant 0 : index
    %c0_18 = arith.constant 0 : index
    %24 = vector.load %arg4[%c1_16, %c0_17, %c0_18] : memref<2x1x64xf32, #tpu.memory_space<vmem>>, vector<1x1x64xf32>
    %25 = vector.shape_cast %24 : vector<1x1x64xf32> to vector<1x64xf32>
    %26 = vector.broadcast %25 : vector<1x64xf32> to vector<8x64xf32>
    %27 = arith.addf %23, %26 : vector<8x64xf32>
    %28 = vector.extract_strided_slice %27 {offsets = [0, 0], sizes = [8, 32], strides = [1, 1]} : vector<8x64xf32> to vector<8x32xf32>
    %29 = vector.extract_strided_slice %27 {offsets = [0, 32], sizes = [8, 32], strides = [1, 1]} : vector<8x64xf32> to vector<8x32xf32>
    %30 = arith.mulf %18, %2 : vector<8x32xf32>
    %31 = arith.addf %30, %19 : vector<8x32xf32>
    %c0_19 = arith.constant 0 : index
    %c0_20 = arith.constant 0 : index
    %c0_21 = arith.constant 0 : index
    %32 = vector.load %arg5[%c0_19, %c0_20, %c0_21] : memref<2x32x64xf32, #tpu.memory_space<vmem>>, vector<1x32x64xf32>
    %33 = vector.shape_cast %32 : vector<1x32x64xf32> to vector<32x64xf32>
    %cst_22 = arith.constant dense<0.000000e+00> : vector<8x64xf32>
    %34 = tpu.matmul %31, %33, %cst_22 {dimension_numbers = #tpu.dot_dimension_numbers<[1], [0], [0], [1], [0, 0, 1, 1], [], []>} : vector<8x32xf32>, vector<32x64xf32>, vector<8x64xf32> -> vector<8x64xf32>
    %c0_23 = arith.constant 0 : index
    %c0_24 = arith.constant 0 : index
    %c0_25 = arith.constant 0 : index
    %35 = vector.load %arg7[%c0_23, %c0_24, %c0_25] : memref<2x2x64xf32, #tpu.memory_space<vmem>>, vector<1x2x64xf32>
    %36 = vector.shape_cast %35 : vector<1x2x64xf32> to vector<2x64xf32>
    %37 = vector.extract_strided_slice %36 {offsets = [0, 0], sizes = [1, 64], strides = [1, 1]} : vector<2x64xf32> to vector<1x64xf32>
    %38 = vector.extract_strided_slice %36 {offsets = [1, 0], sizes = [1, 64], strides = [1, 1]} : vector<2x64xf32> to vector<1x64xf32>
    %cst_26 = arith.constant dense<0.000000e+00> : vector<64xf32>
    %39 = vector.multi_reduction <add>, %34, %cst_26 [0] : vector<8x64xf32> to vector<64xf32>
    %40 = vector.shape_cast %39 : vector<64xf32> to vector<1x64xf32>
    %cst_27 = arith.constant 8.000000e+00 : f32
    %41 = vector.broadcast %cst_27 : f32 to vector<1x64xf32>
    %42 = arith.divf %40, %41 : vector<1x64xf32>
    %43 = vector.broadcast %42 : vector<1x64xf32> to vector<8x64xf32>
    %44 = arith.subf %34, %43 : vector<8x64xf32>
    %45 = arith.mulf %44, %44 : vector<8x64xf32>
    %cst_28 = arith.constant dense<0.000000e+00> : vector<64xf32>
    %46 = vector.multi_reduction <add>, %45, %cst_28 [0] : vector<8x64xf32> to vector<64xf32>
    %47 = vector.shape_cast %46 : vector<64xf32> to vector<1x64xf32>
    %cst_29 = arith.constant 8.000000e+00 : f32
    %48 = vector.broadcast %cst_29 : f32 to vector<1x64xf32>
    %49 = arith.divf %47, %48 : vector<1x64xf32>
    %cst_30 = arith.constant 9.99999974E-6 : f32
    %50 = vector.broadcast %cst_30 : f32 to vector<1x64xf32>
    %51 = arith.addf %49, %50 : vector<1x64xf32>
    %52 = math.rsqrt %51 : vector<1x64xf32>
    %53 = arith.mulf %37, %52 : vector<1x64xf32>
    %54 = arith.mulf %42, %53 : vector<1x64xf32>
    %55 = arith.subf %38, %54 : vector<1x64xf32>
    %56 = vector.broadcast %53 : vector<1x64xf32> to vector<8x64xf32>
    %57 = arith.mulf %34, %56 : vector<8x64xf32>
    %58 = vector.broadcast %55 : vector<1x64xf32> to vector<8x64xf32>
    %59 = arith.addf %57, %58 : vector<8x64xf32>
    %cst_31 = arith.constant 0.000000e+00 : f32
    %60 = vector.broadcast %cst_31 : f32 to vector<8x64xf32>
    %61 = arith.maximumf %59, %60 : vector<8x64xf32>
    %c0_32 = arith.constant 0 : index
    %c0_33 = arith.constant 0 : index
    %c0_34 = arith.constant 0 : index
    %62 = vector.load %arg6[%c0_32, %c0_33, %c0_34] : memref<2x64x32xf32, #tpu.memory_space<vmem>>, vector<1x64x32xf32>
    %63 = vector.shape_cast %62 : vector<1x64x32xf32> to vector<64x32xf32>
    %cst_35 = arith.constant dense<0.000000e+00> : vector<8x32xf32>
    %64 = tpu.matmul %61, %63, %cst_35 {dimension_numbers = #tpu.dot_dimension_numbers<[1], [0], [0], [1], [0, 0, 1, 1], [], []>} : vector<8x64xf32>, vector<64x32xf32>, vector<8x32xf32> -> vector<8x32xf32>
    %c0_36 = arith.constant 0 : index
    %c0_37 = arith.constant 0 : index
    %c0_38 = arith.constant 0 : index
    %65 = vector.load %arg8[%c0_36, %c0_37, %c0_38] : memref<2x2x32xf32, #tpu.memory_space<vmem>>, vector<1x2x32xf32>
    %66 = vector.shape_cast %65 : vector<1x2x32xf32> to vector<2x32xf32>
    %67 = vector.extract_strided_slice %66 {offsets = [0, 0], sizes = [1, 32], strides = [1, 1]} : vector<2x32xf32> to vector<1x32xf32>
    %68 = vector.extract_strided_slice %66 {offsets = [1, 0], sizes = [1, 32], strides = [1, 1]} : vector<2x32xf32> to vector<1x32xf32>
    %cst_39 = arith.constant dense<0.000000e+00> : vector<32xf32>
    %69 = vector.multi_reduction <add>, %64, %cst_39 [0] : vector<8x32xf32> to vector<32xf32>
    %70 = vector.shape_cast %69 : vector<32xf32> to vector<1x32xf32>
    %cst_40 = arith.constant 8.000000e+00 : f32
    %71 = vector.broadcast %cst_40 : f32 to vector<1x32xf32>
    %72 = arith.divf %70, %71 : vector<1x32xf32>
    %73 = vector.broadcast %72 : vector<1x32xf32> to vector<8x32xf32>
    %74 = arith.subf %64, %73 : vector<8x32xf32>
    %75 = arith.mulf %74, %74 : vector<8x32xf32>
    %cst_41 = arith.constant dense<0.000000e+00> : vector<32xf32>
    %76 = vector.multi_reduction <add>, %75, %cst_41 [0] : vector<8x32xf32> to vector<32xf32>
    %77 = vector.shape_cast %76 : vector<32xf32> to vector<1x32xf32>
    %cst_42 = arith.constant 8.000000e+00 : f32
    %78 = vector.broadcast %cst_42 : f32 to vector<1x32xf32>
    %79 = arith.divf %77, %78 : vector<1x32xf32>
    %cst_43 = arith.constant 9.99999974E-6 : f32
    %80 = vector.broadcast %cst_43 : f32 to vector<1x32xf32>
    %81 = arith.addf %79, %80 : vector<1x32xf32>
    %82 = math.rsqrt %81 : vector<1x32xf32>
    %83 = arith.mulf %67, %82 : vector<1x32xf32>
    %84 = arith.mulf %72, %83 : vector<1x32xf32>
    %85 = arith.subf %68, %84 : vector<1x32xf32>
    %86 = vector.broadcast %83 : vector<1x32xf32> to vector<8x32xf32>
    %87 = arith.mulf %64, %86 : vector<8x32xf32>
    %88 = vector.broadcast %85 : vector<1x32xf32> to vector<8x32xf32>
    %89 = arith.addf %87, %88 : vector<8x32xf32>
    %90 = arith.addf %89, %2 : vector<8x32xf32>
    %91 = arith.mulf %28, %90 : vector<8x32xf32>
    %92 = arith.addf %91, %29 : vector<8x32xf32>
    %c1_44 = arith.constant 1 : index
    %c0_45 = arith.constant 0 : index
    %c0_46 = arith.constant 0 : index
    %93 = vector.load %arg5[%c1_44, %c0_45, %c0_46] : memref<2x32x64xf32, #tpu.memory_space<vmem>>, vector<1x32x64xf32>
    %94 = vector.shape_cast %93 : vector<1x32x64xf32> to vector<32x64xf32>
    %cst_47 = arith.constant dense<0.000000e+00> : vector<8x64xf32>
    %95 = tpu.matmul %92, %94, %cst_47 {dimension_numbers = #tpu.dot_dimension_numbers<[1], [0], [0], [1], [0, 0, 1, 1], [], []>} : vector<8x32xf32>, vector<32x64xf32>, vector<8x64xf32> -> vector<8x64xf32>
    %c1_48 = arith.constant 1 : index
    %c0_49 = arith.constant 0 : index
    %c0_50 = arith.constant 0 : index
    %96 = vector.load %arg7[%c1_48, %c0_49, %c0_50] : memref<2x2x64xf32, #tpu.memory_space<vmem>>, vector<1x2x64xf32>
    %97 = vector.shape_cast %96 : vector<1x2x64xf32> to vector<2x64xf32>
    %98 = vector.extract_strided_slice %97 {offsets = [0, 0], sizes = [1, 64], strides = [1, 1]} : vector<2x64xf32> to vector<1x64xf32>
    %99 = vector.extract_strided_slice %97 {offsets = [1, 0], sizes = [1, 64], strides = [1, 1]} : vector<2x64xf32> to vector<1x64xf32>
    %cst_51 = arith.constant dense<0.000000e+00> : vector<64xf32>
    %100 = vector.multi_reduction <add>, %95, %cst_51 [0] : vector<8x64xf32> to vector<64xf32>
    %101 = vector.shape_cast %100 : vector<64xf32> to vector<1x64xf32>
    %cst_52 = arith.constant 8.000000e+00 : f32
    %102 = vector.broadcast %cst_52 : f32 to vector<1x64xf32>
    %103 = arith.divf %101, %102 : vector<1x64xf32>
    %104 = vector.broadcast %103 : vector<1x64xf32> to vector<8x64xf32>
    %105 = arith.subf %95, %104 : vector<8x64xf32>
    %106 = arith.mulf %105, %105 : vector<8x64xf32>
    %cst_53 = arith.constant dense<0.000000e+00> : vector<64xf32>
    %107 = vector.multi_reduction <add>, %106, %cst_53 [0] : vector<8x64xf32> to vector<64xf32>
    %108 = vector.shape_cast %107 : vector<64xf32> to vector<1x64xf32>
    %cst_54 = arith.constant 8.000000e+00 : f32
    %109 = vector.broadcast %cst_54 : f32 to vector<1x64xf32>
    %110 = arith.divf %108, %109 : vector<1x64xf32>
    %cst_55 = arith.constant 9.99999974E-6 : f32
    %111 = vector.broadcast %cst_55 : f32 to vector<1x64xf32>
    %112 = arith.addf %110, %111 : vector<1x64xf32>
    %113 = math.rsqrt %112 : vector<1x64xf32>
    %114 = arith.mulf %98, %113 : vector<1x64xf32>
    %115 = arith.mulf %103, %114 : vector<1x64xf32>
    %116 = arith.subf %99, %115 : vector<1x64xf32>
    %117 = vector.broadcast %114 : vector<1x64xf32> to vector<8x64xf32>
    %118 = arith.mulf %95, %117 : vector<8x64xf32>
    %119 = vector.broadcast %116 : vector<1x64xf32> to vector<8x64xf32>
    %120 = arith.addf %118, %119 : vector<8x64xf32>
    %cst_56 = arith.constant 0.000000e+00 : f32
    %121 = vector.broadcast %cst_56 : f32 to vector<8x64xf32>
    %122 = arith.maximumf %120, %121 : vector<8x64xf32>
    %c1_57 = arith.constant 1 : index
    %c0_58 = arith.constant 0 : index
    %c0_59 = arith.constant 0 : index
    %123 = vector.load %arg6[%c1_57, %c0_58, %c0_59] : memref<2x64x32xf32, #tpu.memory_space<vmem>>, vector<1x64x32xf32>
    %124 = vector.shape_cast %123 : vector<1x64x32xf32> to vector<64x32xf32>
    %cst_60 = arith.constant dense<0.000000e+00> : vector<8x32xf32>
    %125 = tpu.matmul %122, %124, %cst_60 {dimension_numbers = #tpu.dot_dimension_numbers<[1], [0], [0], [1], [0, 0, 1, 1], [], []>} : vector<8x64xf32>, vector<64x32xf32>, vector<8x32xf32> -> vector<8x32xf32>
    %c1_61 = arith.constant 1 : index
    %c0_62 = arith.constant 0 : index
    %c0_63 = arith.constant 0 : index
    %126 = vector.load %arg8[%c1_61, %c0_62, %c0_63] : memref<2x2x32xf32, #tpu.memory_space<vmem>>, vector<1x2x32xf32>
    %127 = vector.shape_cast %126 : vector<1x2x32xf32> to vector<2x32xf32>
    %128 = vector.extract_strided_slice %127 {offsets = [0, 0], sizes = [1, 32], strides = [1, 1]} : vector<2x32xf32> to vector<1x32xf32>
    %129 = vector.extract_strided_slice %127 {offsets = [1, 0], sizes = [1, 32], strides = [1, 1]} : vector<2x32xf32> to vector<1x32xf32>
    %cst_64 = arith.constant dense<0.000000e+00> : vector<32xf32>
    %130 = vector.multi_reduction <add>, %125, %cst_64 [0] : vector<8x32xf32> to vector<32xf32>
    %131 = vector.shape_cast %130 : vector<32xf32> to vector<1x32xf32>
    %cst_65 = arith.constant 8.000000e+00 : f32
    %132 = vector.broadcast %cst_65 : f32 to vector<1x32xf32>
    %133 = arith.divf %131, %132 : vector<1x32xf32>
    %134 = vector.broadcast %133 : vector<1x32xf32> to vector<8x32xf32>
    %135 = arith.subf %125, %134 : vector<8x32xf32>
    %136 = arith.mulf %135, %135 : vector<8x32xf32>
    %cst_66 = arith.constant dense<0.000000e+00> : vector<32xf32>
    %137 = vector.multi_reduction <add>, %136, %cst_66 [0] : vector<8x32xf32> to vector<32xf32>
    %138 = vector.shape_cast %137 : vector<32xf32> to vector<1x32xf32>
    %cst_67 = arith.constant 8.000000e+00 : f32
    %139 = vector.broadcast %cst_67 : f32 to vector<1x32xf32>
    %140 = arith.divf %138, %139 : vector<1x32xf32>
    %cst_68 = arith.constant 9.99999974E-6 : f32
    %141 = vector.broadcast %cst_68 : f32 to vector<1x32xf32>
    %142 = arith.addf %140, %141 : vector<1x32xf32>
    %143 = math.rsqrt %142 : vector<1x32xf32>
    %144 = arith.mulf %128, %143 : vector<1x32xf32>
    %145 = arith.mulf %133, %144 : vector<1x32xf32>
    %146 = arith.subf %129, %145 : vector<1x32xf32>
    %147 = vector.broadcast %144 : vector<1x32xf32> to vector<8x32xf32>
    %148 = arith.mulf %125, %147 : vector<8x32xf32>
    %149 = vector.broadcast %146 : vector<1x32xf32> to vector<8x32xf32>
    %150 = arith.addf %148, %149 : vector<8x32xf32>
    %151 = arith.addf %150, %90 : vector<8x32xf32>
    %c0_69 = arith.constant 0 : index
    %c0_70 = arith.constant 0 : index
    %152 = vector.load %arg9[%c0_69, %c0_70] : memref<32x128xf32, #tpu.memory_space<vmem>>, vector<32x128xf32>
    %cst_71 = arith.constant dense<0.000000e+00> : vector<8x128xf32>
    %153 = tpu.matmul %151, %152, %cst_71 {dimension_numbers = #tpu.dot_dimension_numbers<[1], [0], [0], [1], [0, 0, 1, 1], [], []>} : vector<8x32xf32>, vector<32x128xf32>, vector<8x128xf32> -> vector<8x128xf32>
    %c0_72 = arith.constant 0 : index
    %c0_73 = arith.constant 0 : index
    %154 = vector.load %arg10[%c0_72, %c0_73] : memref<1x128xf32, #tpu.memory_space<vmem>>, vector<1x128xf32>
    %155 = vector.broadcast %154 : vector<1x128xf32> to vector<8x128xf32>
    %156 = arith.addf %153, %155 : vector<8x128xf32>
    %c0_74 = arith.constant 0 : index
    %c0_75 = arith.constant 0 : index
    %157 = vector.load %arg11[%c0_74, %c0_75] : memref<8x128xf32, #tpu.memory_space<vmem>>, vector<8x128xf32>
    tpu.vector_store %arg11[%c0_74, %c0_75], %156 {strides = array<i32>} : memref<8x128xf32, #tpu.memory_space<vmem>>, vector<8x128xf32>,
    return
  }
}

</mosaic_0001>

<bundles_post_ra>
// kernel: film_residual_model.1
= control target key start
LH: loop header
LB: loop body
LE: loop exit
PB: predicated region body
PF: predicated region fallthrough
CT: control target
= control target key end

     0   :  { %v1165_v2 = vmov 0.0|0.0   ;;  %vm1166_vm0 = vmmov 0   ;;  %v1167_v6 = vmov 0.0   ;;  %s1462_s0 = inlined_call_operand.vmem [shape: f32[8,49], index: 0, kind: input, shape index: {}]   ;;  %s1463_s1 = inlined_call_operand.vmem [shape: f32[17,64], index: 1, kind: input, shape index: {}]   ;;  %s1464_s2 = inlined_call_operand.vmem [shape: f32[1,64], index: 2, kind: input, shape index: {}]   ;;  %s1465_s3 = inlined_call_operand.vmem [shape: f32[2,32,64], index: 3, kind: input, shape index: {}]   ;;  %s1466_s4 = inlined_call_operand.vmem [shape: f32[2,1,64], index: 4, kind: input, shape index: {}]   ;;  %s1467_s5 = inlined_call_operand.vmem [shape: f32[2,32,64], index: 5, kind: input, shape index: {}]   ;;  %s1468_s6 = inlined_call_operand.vmem [shape: f32[2,64,32], index: 6, kind: input, shape index: {}]   ;;  %s1469_s7 = inlined_call_operand.vmem [shape: f32[2,2,64], index: 7, kind: input, shape index: {}]   ;;  %s1470_s8 = inlined_call_operand.vmem [shape: f32[2,2,32], index: 8, kind: input, shape index: {}]   ;;  %s1471_s9 = inlined_call_operand.vmem [shape: f32[32,128], index: 9, kind: input, shape index: {}]   ;;  %s1472_s10 = inlined_call_operand.vmem [shape: f32[1,128], index: 10, kind: input, shape index: {}]   ;;  %s1473_s11 = inlined_call_operand.hbm [shape: f32[8,128], index: 11, kind: output, shape index: {}]  }
   0x1   :  { %v40_v0 = vld [vmem:[%s1463_s1] sm:$0xff]  ;;  %v41_v1 = vld [vmem:[%s1463_s1 + $0x8] sm:$0xff]  ;;  %1070 = vmatprep.subr.bf16.mxu0 %v1165_v2  ;;  %1073 = vmatprep.subr.bf16.mxu1 %v1165_v2 }
   0x2   :  { %v1071_v3 = vpack.c.bf16 %v41_v1, %v40_v0  ;;  %v129_v4 = vld [vmem:[%s1465_s3] sm:$0xff]  ;;  %v130_v5 = vld [vmem:[%s1465_s3 + $0x8] sm:$0xff]  ;;  %974 = vmatprep.mubr.msk.f32.mxu0 %vm1166_vm0, %v1167_v6  ;;  %985 = vmatprep.mubr.msk.f32.mxu1 %vm1166_vm0, %v1167_v6 }
   0x3   :  { %v1074_v7 = vpack.c.bf16 %v130_v5, %v129_v4 }
   0x4   :  { %16 = vsyncpa [#allocation3], 0  ;;  %1072 = vmatpush3.bf16.msra.mxu0 %v1071_v3  ;;  %v42_v8 = vld [vmem:[%s1463_s1 + $0x10] sm:$0x1]  ;;  %vm54_vm1 = vcmask 1040384   ;;  %v39_v9 = vld [vmem:[%s1462_s0] sm:$0xff] }
   0x5   :  { %972 = vmatprep.subr.mxu0 %v1167_v6  ;;  %1075 = vmatpush3.bf16.msra.mxu1 %v1074_v7  ;;  %vm50_vm2 = vcmask 138240   ;;  %v131_v10 = vld [vmem:[%s1465_s3 + $0x10] sm:$0xff]  ;;  %v132_v11 = vld [vmem:[%s1465_s3 + $0x18] sm:$0xff]  ;;  %v894_v13 = vld [vmem:[%s1465_s3 + $0x20] sm:$0xff]  ;;  %s1168_s18 = smov 111   ;;  %vm140_vm3 = vcmask 261120  }
   0x6   :  { %1076 = vmatprep.subr.bf16.mxu1 %v1165_v2  ;;  %v1077_v12 = vpack.c.bf16 %v132_v11, %v131_v10  ;;  %v895_v14 = vld [vmem:[%s1465_s3 + $0x28] sm:$0xff]  ;;  %v896_v15 = vld [vmem:[%s1465_s3 + $0x30] sm:$0xff]  ;;  %301 = vrot.lane.b32.xlu0 %v39_v9, %s1168_s18  ;;  %v897_v17 = vld [vmem:[%s1465_s3 + $0x38] sm:$0xff]  ;;  %s1169_s23 = smov 96   ;;  %vm388_vm4 = vcmask 523264  }
   0x7   :  { %v1080_v16 = vpack.c.bf16 %v895_v14, %v894_v13  ;;  %v1083_v18 = vpack.c.bf16 %v897_v17, %v896_v15  ;;  %v889_v19 = vld [vmem:[%s1464_s2] ss:$0 sm:$0xff]  ;;  %v311_v25 = vld [vmem:[%s1467_s5 + $0x8] sm:$0xff]  ;;  %v312_v28 = vld [vmem:[%s1467_s5 + $0x10] sm:$0xff]  ;;  %v416_v14 = vlaneseq }
   0x8   :  { %973 = vmatpush3.msk.msra.mxu0 %vm54_vm1, %v42_v8  ;;  %v310_v24 = vld [vmem:[%s1467_s5] sm:$0xff]  ;;  %v313_v29 = vld [vmem:[%s1467_s5 + $0x18] sm:$0xff]  ;;  %v428_v44 = vld [vmem:[%s1468_s6 + $0x8] sm:$0xff] }
   0x9   :  { %975 = vmatmul.mubr.msk.f32.vlgmr.msra.gmra.mrb[0].mxu0 %vm50_vm2, %v39_v9  ;;  %1079 = vmatprep.subr.bf16.mxu0 %v1165_v2  ;;  %v1086_v26 = vpack.c.bf16 %v311_v25, %v310_v24  ;;  %v1089_v30 = vpack.c.bf16 %v313_v29, %v312_v28  ;;  %v892_v31 = vld [vmem:[%s1466_s4] ss:$0 sm:$0xff]  ;;  %v899_v36 = vld [vmem:[%s1466_s4 + $0x1] ss:$0 sm:$0xff]  ;;  %v429_v46 = vld [vmem:[%s1468_s6 + $0x10] sm:$0xff]  ;;  %v417_v15 = vshrl.u32 %v416_v14, 7 }
   0xa   :  { %996 = vmatprep.mubr.msk.f32.mxu0 %vm1166_vm0, %v1167_v6  ;;  %1078 = vmatpush3.bf16.msra.mxu1 %v1077_v12  ;;  %v427_v43 = vld [vmem:[%s1468_s6] sm:$0xff]  ;;  %v430_v47 = vld [vmem:[%s1468_s6 + $0x18] sm:$0xff]  ;;  %v432_v50 = vld [vmem:[%s1468_s6 + $0x28] sm:$0xff] }
   0xb   :  { %1085 = vmatprep.subr.bf16.mxu1 %v1165_v2  ;;  %1081 = vmatpush3.bf16.msra.mxu0 %v1080_v16  ;;  %v1092_v45 = vpack.c.bf16 %v428_v44, %v427_v43  ;;  %v1095_v48 = vpack.c.bf16 %v430_v47, %v429_v46  ;;  %v431_v49 = vld [vmem:[%s1468_s6 + $0x20] sm:$0xff]  ;;  %v433_v52 = vld [vmem:[%s1468_s6 + $0x30] sm:$0xff]  ;;  %v434_v53 = vld [vmem:[%s1468_s6 + $0x38] sm:$0xff] }
   0xc   :  { %1082 = vmatprep.subr.bf16.mxu0 %v1165_v2  ;;  %v1098_v51 = vpack.c.bf16 %v432_v50, %v431_v49  ;;  %v1101_v54 = vpack.c.bf16 %v434_v53, %v433_v52  ;;  %v387_v16 = vld [vmem:[%s1469_s7] sm:$0x3]  ;;  %v914_v14 = vld [vmem:[%s1468_s6 + $0x68] sm:$0xff] }
   0xd   :  { %v903_v29 = vld [vmem:[%s1467_s5 + $0x20] sm:$0xff] }
   0xf   :  { %1084 = vmatpush3.bf16.msra.mxu0 %v1083_v18 }
  0x10   :  { %1091 = vmatprep.subr.bf16.mxu0 %v1165_v2 }
  0x78   :  { %v1307_v35 = vpop.permute.xlu0 %301 }
  0xdc   :  { %v124_v20 = vpop.f32.mrb[0].mxu0 }
  0xdd   :  { %v125_v21 = vadd.f32 %v889_v19, %v124_v20  ;;  %v976_v22 = vpop.f32.mrb[1].mxu0  ;;  %v1352_v19 = vsub.s32 0, %v417_v15 }
  0xdf   :  { %v128_v23 = vmax.f32 %v125_v21, 0.0 }
  0xe1   :  { %227 = vrot.lane.b32.xlu1 %v128_v23, %s1169_s23  ;;  %986 = vmatmul.mubr.msk.f32.vlgmr.msra.gmra.mrb[0].mxu1 %vm140_vm3, %v128_v23  ;;  %v1355_v23 = vsub.s32 1, %v417_v15 }
  0xe2   :  { %1007 = vmatprep.mubr.msk.f32.mxu1 %vm1166_vm0, %v1167_v6  ;;  %1087 = vmatpush3.bf16.msra.mxu1 %v1086_v26 }
  0xe3   :  { %1088 = vmatprep.subr.bf16.mxu1 %v1165_v2 }
  0xe6   :  { %1090 = vmatpush3.bf16.msra.mxu1 %v1089_v30  ;;  %v904_v30 = vld [vmem:[%s1467_s5 + $0x28] sm:$0xff] }
  0xe7   :  { %1103 = vmatprep.subr.bf16.mxu1 %v1165_v2 }
 0x153   :  { %v228_v27 = vpop.permute.xlu1 %227 }
 0x154   :  { %997 = vmatmul.mubr.msk.f32.vlgmr.msra.gmra.mrb[2].mxu0 %vm140_vm3, %v228_v27 }
 0x155   :  { %1026 = vmatprep.mubr.msk.f32.mxu0 %vm1166_vm0, %v1167_v6  ;;  %1093 = vmatpush3.bf16.msra.mxu0 %v1092_v45 }
 0x156   :  { %1094 = vmatprep.subr.bf16.mxu0 %v1165_v2 }
 0x159   :  { %1096 = vmatpush3.bf16.msra.mxu0 %v1095_v48 }
 0x15a   :  { %1097 = vmatprep.subr.bf16.mxu0 %v1165_v2 }
 0x15d   :  { %1099 = vmatpush3.bf16.msra.mxu0 %v1098_v51 }
 0x15e   :  { %1100 = vmatprep.subr.bf16.mxu0 %v1165_v2 }
 0x161   :  { %1102 = vmatpush3.bf16.msra.mxu0 %v1101_v54 }
 0x162   :  { %1121 = vmatprep.subr.bf16.mxu0 %v1165_v2 }
 0x1b4   :  { %v210_v32 = vpop.f32.mrb[0].mxu1 }
 0x1b5   :  { %v211_v33 = vadd.f32 %v892_v31, %v210_v32  ;;  %v987_v34 = vpop.f32.mrb[1].mxu1  ;;  %v1104_v31 = vpack.c.bf16 %v904_v30, %v903_v29  ;;  %v905_v32 = vld [vmem:[%s1467_s5 + $0x30] sm:$0xff] }
 0x1b7   :  { %306 = vrot.lane.b32.xlu0 %v211_v33, %s1169_s23  ;;  %v304_v38 = vmul.f32 %v1307_v35, %v211_v33  ;;  %v906_v33 = vld [vmem:[%s1467_s5 + $0x38] sm:$0xff] }
 0x1b8   :  { %v1107_v34 = vpack.c.bf16 %v906_v33, %v905_v32 }
 0x227   :  { %v297_v37 = vpop.f32.mrb[2].mxu0 }
 0x228   :  { %v1313_v39 = vadd.f32 %v899_v36, %v297_v37  ;;  %v998_v40 = vpop.f32.mrb[3].mxu0 }
 0x229   :  { %v307_v41 = vpop.permute.xlu0 %306 }
 0x22a   :  { %v309_v42 = vadd.f32 %v307_v41, %v304_v38  ;;  %548 = vrot.lane.b32.xlu1 %v1313_v39, %s1169_s23 }
 0x22c   :  { %1008 = vmatmul.mubr.msk.f32.vlgmr.msra.gmra.mrb[2].mxu1 %vm140_vm3, %v309_v42 }
 0x22d   :  { %1037 = vmatprep.mubr.msk.f32.mxu1 %vm1166_vm0, %v1167_v6  ;;  %1105 = vmatpush3.bf16.msra.mxu1 %v1104_v31 }
 0x22e   :  { %1106 = vmatprep.subr.bf16.mxu1 %v1165_v2 }
 0x231   :  { %1108 = vmatpush3.bf16.msra.mxu1 %v1107_v34 }
 0x232   :  { %1109 = vmatprep.subr.bf16.mxu1 %v1165_v2 }
 0x2ff   :  { %v383_v55 = vpop.f32.mrb[2].mxu1 }
 0x300   :  { %v389_v56 = vsel %vm388_vm4, %v383_v55, 0.0  ;;  %v1009_v57 = vpop.f32.mrb[3].mxu1 }
 0x301   :  { %v390_v58 = vrot.slane %v389_v56, 4 }
 0x303   :  { %v391_v59 = vadd.f32 %v390_v58, %v389_v56  ;;  %v508_v58 = vld [vmem:[%s1470_s8] sm:$0x3] }
 0x305   :  { %v392_v60 = vrot.slane %v391_v59, 2 }
 0x307   :  { %v393_v61 = vadd.f32 %v392_v60, %v391_v59 }
 0x309   :  { %v394_v62 = vrot.slane %v393_v61, 1 }
 0x30b   :  { %v395_v63 = vadd.f32 %v394_v62, %v393_v61 }
 0x30d   :  { %v397_v0 = vmul.f32 0.125, %v395_v63 }
 0x30f   :  { %v398_v1 = vsub.f32 %v383_v55, %v397_v0 }
 0x311   :  { %v399_v3 = vmul.f32 %v398_v1, %v398_v1 }
 0x313   :  { %v400_v4 = vsel %vm388_vm4, %v399_v3, 0.0 }
 0x314   :  { %v401_v5 = vrot.slane %v400_v4, 4 }
 0x316   :  { %v402_v7 = vadd.f32 %v401_v5, %v400_v4 }
 0x318   :  { %v403_v8 = vrot.slane %v402_v7, 2 }
 0x31a   :  { %v404_v9 = vadd.f32 %v403_v8, %v402_v7  ;;  %v549_v8 = vpop.permute.xlu1 %548 }
 0x31c   :  { %v405_v10 = vrot.slane %v404_v9, 1 }
 0x31e   :  { %v406_v11 = vadd.f32 %v405_v10, %v404_v9  ;;  %v909_v10 = vld [vmem:[%s1468_s6 + $0x40] sm:$0xff] }
 0x320   :  { %v407_v12 = vmul.f32 0.125, %v406_v11  ;;  %v910_v11 = vld [vmem:[%s1468_s6 + $0x48] sm:$0xff] }
 0x322   :  { %v408_v13 = vadd.f32 1e-05, %v407_v12 }
 0x324   :  { %1133 = vrsqrt.f32 %v408_v13  ;;  %v913_v13 = vld [vmem:[%s1468_s6 + $0x60] sm:$0xff] }
 0x325   :  { %v1116_v15 = vpack.c.bf16 %v914_v14, %v913_v13 }
 0x32e   :  { %v1134_v17 = vpop.eup %1133 }
 0x32f   :  { %v410_v18 = vmul.f32 %v1134_v17, %v387_v16  ;;  %v916_v17 = vld [vmem:[%s1468_s6 + $0x78] sm:$0xff] }
 0x331   :  { %v411_v20 = vmul.f32 %v410_v18, %v397_v0  ;;  %v419_v22 = vrot.slane %v410_v18, %v1352_v19 }
 0x333   :  { %v413_v21 = vrot.slane %v411_v20, 7  ;;  %v420_v25 = vmul.f32 %v419_v22, %v383_v55 }
 0x335   :  { %v415_v24 = vsub.f32 %v387_v16, %v413_v21  ;;  %v915_v16 = vld [vmem:[%s1468_s6 + $0x70] sm:$0xff] }
 0x336   :  { %v1119_v18 = vpack.c.bf16 %v916_v17, %v915_v16  ;;  %v918_v17 = vld [vmem:[%s1470_s8 + $0x2] sm:$0x3]  ;;  %s1170_s8 = smov [#allocation2]  }
 0x337   :  { %v424_v26 = vrot.slane %v415_v24, %v1355_v23  ;;  %s881_s17 = sshll.u32 %s1170_s8, 4  ;;  %s882_s17 = int_to_ptr.vmem [resolvable:$true] %s881_s17 }
 0x338   :  { %s1141_s18 = scalar_lea.vmem %s882_s17, 128  ;;  %p1146_p1 = scmp.lt.s32.totalorder %s882_s17, %s882_s17 }
 0x339   :  { %v425_v27 = vadd.f32 %v424_v26, %v420_v25  ;;  %p1142_p0 = scmp.ne.s32.totalorder %s882_s17, %s1141_s18  ;;  %p1147_p2 = scmp.lt.s32.totalorder %s1141_s18, %s1141_s18 }
 0x33b   :  { %v426_v28 = vmax.f32 %v425_v27, 0.0  ;;  %p1148_p3 = por %p1147_p2, %p1146_p1 }
 0x33d   :  { %1027 = vmatmul.mubr.msk.f32.vlgmr.msra.gmra.mrb[4].mxu0 %vm388_vm4, %v426_v28  ;;  %p1149_p4 = pnand %p1148_p3, %p1142_p0 }
 0x33e   :  { %1067 = vmatprep.mubr.msk.f32.mxu0 %vm1166_vm0, %v1167_v6 }
 0x410   :  { %v504_v36 = vpop.f32.mrb[4].mxu0 }
 0x411   :  { %v509_v37 = vsel %vm140_vm3, %v504_v36, 0.0  ;;  %v1028_v38 = vpop.f32.mrb[5].mxu0 }
 0x412   :  { %v510_v40 = vrot.slane %v509_v37, 4 }
 0x414   :  { %v511_v41 = vadd.f32 %v510_v40, %v509_v37 }
 0x416   :  { %v512_v42 = vrot.slane %v511_v41, 2 }
 0x418   :  { %v513_v43 = vadd.f32 %v512_v42, %v511_v41 }
 0x41a   :  { %v514_v44 = vrot.slane %v513_v43, 1 }
 0x41c   :  { %v515_v45 = vadd.f32 %v514_v44, %v513_v43  ;;  %v908_v44 = vld [vmem:[%s1469_s7 + $0x2] sm:$0x3] }
 0x41e   :  { %v516_v46 = vmul.f32 0.125, %v515_v45 }
 0x420   :  { %v517_v47 = vsub.f32 %v504_v36, %v516_v46 }
 0x422   :  { %v518_v48 = vmul.f32 %v517_v47, %v517_v47 }
 0x424   :  { %v519_v49 = vsel %vm140_vm3, %v518_v48, 0.0 }
 0x425   :  { %v520_v50 = vrot.slane %v519_v49, 4 }
 0x427   :  { %v521_v51 = vadd.f32 %v520_v50, %v519_v49 }
 0x429   :  { %v522_v52 = vrot.slane %v521_v51, 2 }
 0x42b   :  { %v523_v53 = vadd.f32 %v522_v52, %v521_v51 }
 0x42d   :  { %v524_v54 = vrot.slane %v523_v53, 1 }
 0x42f   :  { %v525_v55 = vadd.f32 %v524_v54, %v523_v53 }
 0x431   :  { %v526_v56 = vmul.f32 0.125, %v525_v55  ;;  %v790_v55 = vld [vmem:[%s1471_s9] sm:$0xff] }
 0x433   :  { %v527_v57 = vadd.f32 1e-05, %v526_v56  ;;  %v791_v56 = vld [vmem:[%s1471_s9 + $0x8] sm:$0xff] }
 0x435   :  { %1135 = vrsqrt.f32 %v527_v57  ;;  %v1122_v57 = vpack.c.bf16 %v791_v56, %v790_v55 }
 0x437   :  { %1123 = vmatpush3.bf16.msra.mxu0 %v1122_v57 }
 0x438   :  { %1124 = vmatprep.subr.bf16.mxu0 %v1165_v2 }
 0x43f   :  { %v1136_v59 = vpop.eup %1135 }
 0x440   :  { %v529_v60 = vmul.f32 %v1136_v59, %v508_v58  ;;  %v793_v59 = vld [vmem:[%s1471_s9 + $0x18] sm:$0xff] }
 0x442   :  { %v530_v61 = vmul.f32 %v529_v60, %v516_v46  ;;  %v538_v63 = vrot.slane %v529_v60, %v1352_v19 }
 0x444   :  { %v532_v62 = vrot.slane %v530_v61, 7  ;;  %v539_v1 = vmul.f32 %v538_v63, %v504_v36 }
 0x446   :  { %v534_v0 = vsub.f32 %v508_v58, %v532_v62  ;;  %v792_v58 = vld [vmem:[%s1471_s9 + $0x10] sm:$0xff] }
 0x447   :  { %v1125_v60 = vpack.c.bf16 %v793_v59, %v792_v58 }
 0x448   :  { %v543_v3 = vrot.slane %v534_v0, %v1355_v23 }
 0x449   :  { %1126 = vmatpush3.bf16.msra.mxu0 %v1125_v60 }
 0x44a   :  { %v544_v4 = vadd.f32 %v543_v3, %v539_v1 }
 0x44c   :  { %v1383_v5 = vadd.f32 %v544_v4, %v1307_v35  ;;  %v1110_v35 = vpack.c.bf16 %v910_v11, %v909_v10 }
 0x44e   :  { %v546_v7 = vmul.f32 %v1383_v5, %v1313_v39  ;;  %v911_v39 = vld [vmem:[%s1468_s6 + $0x50] sm:$0xff] }
 0x450   :  { %v551_v9 = vadd.f32 %v549_v8, %v546_v7 }
 0x452   :  { %1038 = vmatmul.mubr.msk.f32.vlgmr.msra.gmra.mrb[4].mxu1 %vm140_vm3, %v551_v9 }
 0x453   :  { %1056 = vmatprep.mubr.msk.f32.mxu1 %vm1166_vm0, %v1167_v6  ;;  %1111 = vmatpush3.bf16.msra.mxu1 %v1110_v35  ;;  %v912_v6 = vld [vmem:[%s1468_s6 + $0x58] sm:$0xff] }
 0x454   :  { %1112 = vmatprep.subr.bf16.mxu1 %v1165_v2  ;;  %v1113_v12 = vpack.c.bf16 %v912_v6, %v911_v39 }
 0x457   :  { %1114 = vmatpush3.bf16.msra.mxu1 %v1113_v12 }
 0x458   :  { %1115 = vmatprep.subr.bf16.mxu1 %v1165_v2 }
 0x45b   :  { %1117 = vmatpush3.bf16.msra.mxu1 %v1116_v15 }
 0x45c   :  { %1118 = vmatprep.subr.bf16.mxu1 %v1165_v2 }
 0x45f   :  { %1120 = vmatpush3.bf16.msra.mxu1 %v1119_v18 }
 0x525   :  { %v626_v20 = vpop.f32.mrb[4].mxu1 }
 0x526   :  { %v632_v21 = vsel %vm388_vm4, %v626_v20, 0.0  ;;  %v1039_v22 = vpop.f32.mrb[5].mxu1 }
 0x527   :  { %v633_v24 = vrot.slane %v632_v21, 4 }
 0x529   :  { %v634_v25 = vadd.f32 %v633_v24, %v632_v21 }
 0x52b   :  { %v635_v26 = vrot.slane %v634_v25, 2 }
 0x52d   :  { %v636_v27 = vadd.f32 %v635_v26, %v634_v25 }
 0x52f   :  { %v637_v28 = vrot.slane %v636_v27, 1 }
 0x531   :  { %v638_v29 = vadd.f32 %v637_v28, %v636_v27 }
 0x533   :  { %v639_v30 = vmul.f32 0.125, %v638_v29 }
 0x535   :  { %v640_v31 = vsub.f32 %v626_v20, %v639_v30 }
 0x537   :  { %v641_v32 = vmul.f32 %v640_v31, %v640_v31 }
 0x539   :  { %v642_v33 = vsel %vm388_vm4, %v641_v32, 0.0 }
 0x53a   :  { %v643_v34 = vrot.slane %v642_v33, 4 }
 0x53c   :  { %v644_v36 = vadd.f32 %v643_v34, %v642_v33 }
 0x53e   :  { %v645_v37 = vrot.slane %v644_v36, 2 }
 0x540   :  { %v646_v38 = vadd.f32 %v645_v37, %v644_v36 }
 0x542   :  { %v647_v40 = vrot.slane %v646_v38, 1 }
 0x544   :  { %v648_v41 = vadd.f32 %v647_v40, %v646_v38 }
 0x546   :  { %v649_v42 = vmul.f32 0.125, %v648_v41 }
 0x548   :  { %v650_v43 = vadd.f32 1e-05, %v649_v42 }
 0x54a   :  { %1137 = vrsqrt.f32 %v650_v43 }
 0x554   :  { %v1138_v45 = vpop.eup %1137 }
 0x555   :  { %v652_v46 = vmul.f32 %v1138_v45, %v908_v44 }
 0x557   :  { %v653_v47 = vmul.f32 %v652_v46, %v639_v30  ;;  %v661_v49 = vrot.slane %v652_v46, %v1352_v19  ;;  %v919_v30 = vld [vmem:[%s1472_s10] ss:$0 sm:$0xff] }
 0x559   :  { %v655_v48 = vrot.slane %v653_v47, 7  ;;  %v662_v51 = vmul.f32 %v661_v49, %v626_v20 }
 0x55b   :  { %v657_v50 = vsub.f32 %v908_v44, %v655_v48 }
 0x55d   :  { %v666_v52 = vrot.slane %v657_v50, %v1355_v23 }
 0x55f   :  { %v667_v53 = vadd.f32 %v666_v52, %v662_v51 }
 0x561   :  { %v668_v54 = vmax.f32 %v667_v53, 0.0 }
 0x563   :  { %1057 = vmatmul.mubr.msk.f32.vlgmr.msra.gmra.mrb[6].mxu1 %vm388_vm4, %v668_v54 }
 0x636   :  { %v747_v61 = vpop.f32.mrb[6].mxu1 }
 0x637   :  { %v753_v62 = vsel %vm140_vm3, %v747_v61, 0.0  ;;  %v1058_v63 = vpop.f32.mrb[7].mxu1 }
 0x638   :  { %v754_v0 = vrot.slane %v753_v62, 4 }
 0x63a   :  { %v755_v1 = vadd.f32 %v754_v0, %v753_v62 }
 0x63c   :  { %v756_v3 = vrot.slane %v755_v1, 2 }
 0x63e   :  { %v757_v4 = vadd.f32 %v756_v3, %v755_v1 }
 0x640   :  { %v758_v7 = vrot.slane %v757_v4, 1 }
 0x642   :  { %v759_v2 = vadd.f32 %v758_v7, %v757_v4 }
 0x644   :  { %v760_v8 = vmul.f32 0.125, %v759_v2 }
 0x646   :  { %v761_v9 = vsub.f32 %v747_v61, %v760_v8 }
 0x648   :  { %v762_v10 = vmul.f32 %v761_v9, %v761_v9 }
 0x64a   :  { %v763_v11 = vsel %vm140_vm3, %v762_v10, 0.0 }
 0x64b   :  { %v764_v35 = vrot.slane %v763_v11, 4 }
 0x64d   :  { %v765_v39 = vadd.f32 %v764_v35, %v763_v11 }
 0x64f   :  { %v766_v6 = vrot.slane %v765_v39, 2 }
 0x651   :  { %v767_v12 = vadd.f32 %v766_v6, %v765_v39 }
 0x653   :  { %v768_v13 = vrot.slane %v767_v12, 1 }
 0x655   :  { %v769_v14 = vadd.f32 %v768_v13, %v767_v12 }
 0x657   :  { %v770_v15 = vmul.f32 0.125, %v769_v14 }
 0x659   :  { %v771_v16 = vadd.f32 1e-05, %v770_v15 }
 0x65b   :  { %1139 = vrsqrt.f32 %v771_v16 }
 0x665   :  { %v1140_v18 = vpop.eup %1139 }
 0x666   :  { %v773_v20 = vmul.f32 %v1140_v18, %v918_v17 }
 0x668   :  { %v774_v21 = vmul.f32 %v773_v20, %v760_v8  ;;  %v782_v24 = vrot.slane %v773_v20, %v1352_v19 }
 0x66a   :  { %v776_v22 = vrot.slane %v774_v21, 7  ;;  %v783_v26 = vmul.f32 %v782_v24, %v747_v61 }
 0x66c   :  { %v778_v25 = vsub.f32 %v918_v17, %v776_v22 }
 0x66e   :  { %v787_v27 = vrot.slane %v778_v25, %v1355_v23 }
 0x670   :  { %v788_v28 = vadd.f32 %v787_v27, %v783_v26 }
 0x672   :  { %v789_v29 = vadd.f32 %v788_v28, %v1383_v5 }
 0x674   :  { %1068 = vmatmul.mubr.msk.f32.vlgmr.msra.gmra.mrb[6].mxu0 %vm140_vm3, %v789_v29 }
 0x747   :  { %v870_v31 = vpop.f32.mrb[6].mxu0 }
 0x748   :  { %v871_v32 = vadd.f32 %v919_v30, %v870_v31  ;;  %v1069_v33 = vpop.f32.mrb[7].mxu0 }
 0x74a   :  { %874 = vst [vmem:[#allocation2] sm:$0xff] %v871_v32 }
 0x74b   :  { %1152 = shalt.err (!%p1149_p4)
}
 0x74c   :  { %s1153_s21 = scalar_lea.hbm %s1473_s11, 128 }
 0x74d   :  { %p1154_p5 = scmp.ne.s32.totalorder %s1473_s11, %s1153_s21  ;;  %p1157_p6 = scmp.lt.u32.totalorder %s1153_s21, %s1473_s11 }
 0x74f   :  { %p1159_p7 = pnand %p1157_p6, %p1154_p5 }
 0x751   :  { %1162 = shalt.err (!%p1159_p7)
}
 0x752   :  { %884 = dma.vmem_to_hbm [thread:$0]  %s882_s17, 128, %s1473_s11, [#allocation3]  }
 0x753   :  { %1163 = dma.done.wait [#allocation3], 128  }
 0x754   :  { %1164 = vsyncadd [#allocation3], 4294967168 }
 0x755   :  { %888 = vsyncpa [#allocation3], 1 }

</bundles_post_ra>
